<compile_context>
chip_gen: v6e
topology: v6e:2x2x1
jax: 0.10.0
libtpu: 0.0.40
codegen_flags: <defaults>
</compile_context>

<pallas_src>
import functools
import numpy as np
import jax
import jax.numpy as jnp
from jax.experimental import pallas as pl
from jax.experimental.pallas import tpu as pltpu


def _tensorcores_per_chip() -> int:
    """Best-effort TensorCore-per-chip count (v7x: 2, v5e/v6e: 1)."""
    try:
        dev = jax.devices()[0]
        if getattr(dev, "platform", "") != "tpu":
            return 1
        kind = str(getattr(dev, "device_kind", "")).lower()
        if "v7" in kind:
            return 2
    except Exception:
        pass
    return 1


# ----------------------------- Pallas kernel --------------------------------
def _synthesis_layer_kernel(x_ref, w_ref, nb_ref, mask_ref, out_ref, patch_ref,
                            *, H, W, kh, kw, act_gain):
    """One grid step == `bs` batch samples (bs = x_ref.shape[0]).

    x_ref    : (bs, Cin, L)     bf16  flat padded activation per sample
    w_ref    : (bs, Cout, KKp)  bf16  demodulated weight, K padded to KKp
    nb_ref   : (Cout, HW)       f32   pre-broadcast noise*strength + bias
    mask_ref : (n_masks, HW)    bf16  horizontal edge masks (one per dcol!=0)
    out_ref  : (bs, Cout, HW)         lane-dense NCHW(flat) output
    patch_ref: (KKp, HW)        bf16  VMEM scratch: im2col patch matrix
    """
    bs, Cin, L = x_ref.shape
    HW = H * W
    KK = kh * kw * Cin
    KKp = patch_ref.shape[0]

    # Zero the K-padding rows of the scratch.  They only meet zero weight
    # rows, but uninitialized VMEM could hold NaN/Inf and 0*NaN would poison
    # the f32 accumulation.  Start at a 16-row (bf16 sublane tile) boundary so
    # the store is unmasked; any overlapped real rows are rewritten below.
    zero_from = ((KK + 15) // 16) * 16
    if KKp > zero_from:
        patch_ref[pl.ds(zero_from, KKp - zero_from), :] = jnp.zeros(
            (KKp - zero_from, HW), patch_ref.dtype)

    # Hoisted loads, shared across samples / taps.
    nb = nb_ref[...]                                    # (Cout, HW) f32
    mask_all = mask_ref[...]                            # (n_masks, HW) bf16
    dcols = [kx - kw // 2 for kx in range(kw) if kx != kw // 2]
    mask_row = {dd: j for j, dd in enumerate(dcols)}

    pair_stores = (2 * Cin == 16)   # two 8-row taps fill one bf16 sublane tile
    gain_pos = jnp.float32(act_gain)
    gain_neg = jnp.float32(0.2 * act_gain)

    for b in range(bs):                                 # static unroll
        xb = x_ref[b]                                   # (Cin, L) bf16

        # ---- im2col: write the (KK, HW) patch matrix into the VMEM scratch.
        pending = None                                  # (row_offset, value)
        t = 0
        for ky in range(kh):
            for kx in range(kw):
                off = ky * W + kx                       # >= 0 (x left/top padded)
                s = xb[:, off:off + HW]                 # (Cin, HW) static lane window
                d = kx - kw // 2
                if d != 0:                              # horizontal edge mask
                    j = mask_row[d]
                    s = s * mask_all[j:j + 1, :]
                if not pair_stores:
                    patch_ref[pl.ds(t * Cin, Cin), :] = s
                elif pending is None:
                    pending = (t * Cin, s)
                else:
                    patch_ref[pl.ds(pending[0], 2 * Cin), :] = jnp.concatenate(
                        [pending[1], s], axis=0)
                    pending = None
                t += 1
        if pending is not None:                         # odd tap count: zero-pad pair
            patch_ref[pl.ds(pending[0], 2 * Cin), :] = jnp.concatenate(
                [pending[1], jnp.zeros((Cin, HW), patch_ref.dtype)], axis=0)

        # ---- single fused MXU matmul: (Cout,KKp)bf16 @ (KKp,HW)bf16, f32 acc.
        acc = jnp.dot(w_ref[b], patch_ref[...],
                      preferred_element_type=jnp.float32)        # (Cout, HW)

        # ---- epilogue: + (noise + bias), lrelu(0.2) with the gain folded in.
        y = acc + nb
        y = y * jnp.where(y >= 0.0, gain_pos, gain_neg)
        out_ref[b] = y.astype(out_ref.dtype)


# ------------------------------ wrapper --------------------------------------
@functools.partial(jax.jit, static_argnames=("gain",))
def synthesis_layer_forward(x_nchw, w_latent, params, *, gain=1.0):
    N, Cin, H, W = x_nchw.shape
    Cout, Cin_w, kh, kw = params["conv_w"].shape
    assert Cin_w == Cin
    w_dim = params["affine_w"].shape[1]
    HW = H * W
    KK = kh * kw * Cin
    KKp = ((KK + 127) // 128) * 128          # pad K to a full 128-lane tile

    # Lane-dense layout assumptions (see perf review): degrade gracefully
    # elsewhere, but assert for this demo config.
    assert HW % 128 == 0 and Cin % 8 == 0 and Cout % 8 == 0, (
        "expected lane/sublane friendly shapes (HW % 128, Cin/Cout % 8)")

    # affine FC: styles = w @ (A_w / sqrt(w_dim)).T + A_b    (lr_mult=1, bias_init=1)
    styles = (w_latent @ (params["affine_w"] * (1.0 / np.sqrt(w_dim))).T
              + params["affine_b"][None, :])                       # (N, Cin)

    # modulation + demodulation (tiny; fused by XLA under this jit), with K
    # reordered as (ky, kx, cin) to match the im2col row order, padded, bf16.
    wmod = params["conv_w"][None] * styles[:, None, :, None, None]  # (N,Cout,Cin,kh,kw)
    d = jax.lax.rsqrt(jnp.sum(wmod * wmod, axis=(2, 3, 4)) + 1e-8)  # (N, Cout)
    wmod = wmod * d[:, :, None, None, None]
    w_k = jnp.transpose(wmod, (0, 1, 3, 4, 2)).reshape(N, Cout, KK)
    w_k = jnp.pad(w_k, ((0, 0), (0, 0), (0, KKp - KK))).astype(jnp.bfloat16)

    # x: pad the top by kh//2 rows and the flat start by kw//2 lanes so every
    # tap offset off = ky*W + kx is non-negative; zero-pad the tail so every
    # window stays in-bounds and L is a multiple of 128.  bf16 (MXU operand).
    pad_top, pad_left = kh // 2, kw // 2
    flat_len = pad_left + (pad_top + H) * W
    max_off = (kh - 1) * W + (kw - 1)
    L = int(np.ceil(max(HW + max_off, flat_len) / 128.0) * 128)
    xf = jnp.pad(x_nchw, ((0, 0), (0, 0), (pad_top, 0), (0, 0)))
    xf = xf.reshape(N, Cin, (pad_top + H) * W)
    xf = jnp.pad(xf, ((0, 0), (0, 0), (pad_left, L - flat_len)))
    xf = xf.astype(jnp.bfloat16)                                    # (N, Cin, L)

    # const noise + bias, pre-broadcast to the (Cout, HW) accumulator layout.
    nb = (params["noise_const"].reshape(1, HW) * params["noise_strength"]
          + params["bias"][:, None]).astype(jnp.float32)            # (Cout, HW)

    # horizontal edge masks, one {0,1} row per nonzero tap column offset.
    dcols = [kx - kw // 2 for kx in range(kw) if kx != kw // 2]
    if dcols:
        col = np.arange(HW) % W
        mask_np = np.stack([((col + dd >= 0) & (col + dd < W)).astype(np.float32)
                            for dd in dcols])
    else:
        mask_np = np.ones((1, HW), np.float32)                       # unused dummy
    masks = jnp.asarray(mask_np, dtype=jnp.bfloat16)                 # (n_masks, HW)

    act_gain = float(np.sqrt(2.0)) * float(gain)                     # lrelu def_gain * gain

    # Batch tiling: merge the batch into one grid step on single-TC chips
    # (v5e/v6e) to avoid per-step overhead; keep one sample per step on
    # multi-TC chips (v7x) so the "parallel" axis is sharded across cores.
    bs = 1 if (_tensorcores_per_chip() > 1 and N > 1) else N
    n_steps = N // bs

    kern = functools.partial(_synthesis_layer_kernel,
                             H=H, W=W, kh=kh, kw=kw, act_gain=act_gain)

    out = pl.pallas_call(
        kern,
        out_shape=jax.ShapeDtypeStruct((N, Cout, HW), x_nchw.dtype),
        grid_spec=pltpu.PrefetchScalarGridSpec(
            num_scalar_prefetch=0,
            grid=(n_steps,),
            in_specs=[
                pl.BlockSpec((bs, Cin, L), lambda i: (i, 0, 0)),     # x
                pl.BlockSpec((bs, Cout, KKp), lambda i: (i, 0, 0)),  # demod weight
                pl.BlockSpec((Cout, HW), lambda i: (0, 0)),          # noise+bias
                pl.BlockSpec(masks.shape, lambda i: (0, 0)),         # edge masks
            ],
            out_specs=pl.BlockSpec((bs, Cout, HW), lambda i: (i, 0, 0)),
            scratch_shapes=[pltpu.VMEM((KKp, HW), jnp.bfloat16)],    # patch matrix
        ),
        compiler_params=pltpu.CompilerParams(
            dimension_semantics=("parallel",)),
    )(xf, w_k, nb, masks)

    # output is already channel-major (NCHW) -- just restore spatial dims.
    return out.reshape(N, Cout, H, W)


# --------------------------- pure-JAX reference ------------------------------
def reference_forward(x, w_latent, params, *, gain=1.0):
    w_dim = params["affine_w"].shape[1]
    styles = (w_latent @ (params["affine_w"] * (1.0 / np.sqrt(w_dim))).T
              + params["affine_b"][None, :])
    weight = params["conv_w"]
    N = x.shape[0]
    wmod = weight[None] * styles[:, None, :, None, None]       # (N,Cout,Cin,kh,kw)
    d = 1.0 / jnp.sqrt(jnp.sum(wmod ** 2, axis=(2, 3, 4)) + 1e-8)
    wmod = wmod * d[:, :, None, None, None]
    outs = []
    for b in range(N):
        outs.append(jax.lax.conv_general_dilated(
            x[b:b + 1], wmod[b], window_strides=(1, 1), padding="SAME",
            dimension_numbers=("NCHW", "OIHW", "NCHW"),
            precision=jax.lax.Precision.HIGHEST))
    out = jnp.concatenate(outs, axis=0)
    out = out + (params["noise_const"] * params["noise_strength"])[None, None, :, :]
    out = out + params["bias"][None, :, None, None]
    out = jnp.where(out >= 0.0, out, 0.2 * out) * (np.sqrt(2.0) * gain)
    return out


# --------------------------------- main --------------------------------------
if __name__ == "__main__":
    # Module config (small): in_channels=8, out_channels=8, w_dim=8,
    # resolution=(16,16), up=1, kernel_size=3, activation='lrelu'.
    N, Cin, Cout, w_dim = 2, 8, 8, 8
    H = W = 16
    kh = kw = 3

    key = jax.random.PRNGKey(0)
    k = jax.random.split(key, 6)

    params = {
        # FullyConnectedLayer(w_dim, in_channels, bias_init=1)
        "affine_w": jax.random.normal(k[0], (Cin, w_dim), jnp.float32),
        "affine_b": jnp.ones((Cin,), jnp.float32),
        # conv weight [out_channels, in_channels, kh, kw]
        "conv_w": jax.random.normal(k[1], (Cout, Cin, kh, kw), jnp.float32),
        # noise buffer + strength (strength != 0 to exercise the path)
        "noise_const": jax.random.normal(k[2], (H, W), jnp.float32),
        "noise_strength": jnp.float32(0.1),
        "bias": 0.1 * jax.random.normal(k[5], (Cout,), jnp.float32),
    }

    x = jax.random.normal(k[3], (N, Cin, H, W), jnp.float32)          # NCHW
    w_latent = jax.random.normal(k[4], (N, w_dim), jnp.float32)

    out = jax.block_until_ready(
        synthesis_layer_forward(x, w_latent, params, gain=1.0))
    ref = jax.block_until_ready(
        reference_forward(x, w_latent, params, gain=1.0))

    assert out.shape == (N, Cout, H, W), out.shape
    # bf16 matmul operands (f32 accumulation) vs f32 HIGHEST reference.
    max_err = float(jnp.max(jnp.abs(out - ref)))
    assert max_err < 7.5e-2, f"max abs error too large: {max_err}"

    print("KERNEL_OK")
</pallas_src>

<mosaic_0001>
module attributes {stable_mosaic.version = 11 : i64} {
  func.func @_synthesis_layer_kernel(%arg0: i32, %arg1: memref<2x8x384xbf16, #tpu.memory_space<vmem>>, %arg2: memref<2x8x128xbf16, #tpu.memory_space<vmem>>, %arg3: memref<8x256xf32, #tpu.memory_space<vmem>>, %arg4: memref<2x256xbf16, #tpu.memory_space<vmem>>, %arg5: memref<2x8x256xf32, #tpu.memory_space<vmem>>, %arg6: memref<128x256xbf16, #tpu.memory_space<vmem>>) attributes {dimension_semantics = [#tpu.dimension_semantics<parallel>], iteration_bounds = array<i64: 1>, scalar_prefetch = 0 : i64, scratch_operands = 1 : i64, tpu.core_type = #tpu.core_type<tc>, window_params = [{transform_indices = @transform_0, window_bounds = array<i64: 2, 8, 384>}, {transform_indices = @transform_1, window_bounds = array<i64: 2, 8, 128>}, {pipeline_mode = #tpu.pipeline_mode<synchronous>, transform_indices = @transform_2, window_bounds = array<i64: 8, 256>}, {pipeline_mode = #tpu.pipeline_mode<synchronous>, transform_indices = @transform_3, window_bounds = array<i64: 2, 256>}, {transform_indices = @transform_4, window_bounds = array<i64: 2, 8, 256>}]} {
    %cst = arith.constant 0.000000e+00 : bf16
    %0 = vector.broadcast %cst : bf16 to vector<48x256xbf16>
    %c80 = arith.constant 80 : index
    %c0 = arith.constant 0 : index
    %1 = vector.load %arg6[%c80, %c0] : memref<128x256xbf16, #tpu.memory_space<vmem>>, vector<48x256xbf16>
    tpu.vector_store %arg6[%c80, %c0], %0 {strides = array<i32>} : memref<128x256xbf16, #tpu.memory_space<vmem>>, vector<48x256xbf16>,
    %c0_0 = arith.constant 0 : index
    %c0_1 = arith.constant 0 : index
    %2 = vector.load %arg3[%c0_0, %c0_1] : memref<8x256xf32, #tpu.memory_space<vmem>>, vector<8x256xf32>
    %c0_2 = arith.constant 0 : index
    %c0_3 = arith.constant 0 : index
    %3 = vector.load %arg4[%c0_2, %c0_3] : memref<2x256xbf16, #tpu.memory_space<vmem>>, vector<2x256xbf16>
    %c0_4 = arith.constant 0 : index
    %c0_5 = arith.constant 0 : index
    %c0_6 = arith.constant 0 : index
    %4 = vector.load %arg1[%c0_4, %c0_5, %c0_6] : memref<2x8x384xbf16, #tpu.memory_space<vmem>>, vector<1x8x384xbf16>
    %5 = vector.shape_cast %4 : vector<1x8x384xbf16> to vector<8x384xbf16>
    %6 = vector.extract_strided_slice %5 {offsets = [0, 0], sizes = [8, 256], strides = [1, 1]} : vector<8x384xbf16> to vector<8x256xbf16>
    %7 = vector.extract_strided_slice %3 {offsets = [0, 0], sizes = [1, 256], strides = [1, 1]} : vector<2x256xbf16> to vector<1x256xbf16>
    %8 = vector.broadcast %7 : vector<1x256xbf16> to vector<8x256xbf16>
    %9 = arith.mulf %6, %8 : vector<8x256xbf16>
    %10 = vector.extract_strided_slice %5 {offsets = [0, 1], sizes = [8, 256], strides = [1, 1]} : vector<8x384xbf16> to vector<8x256xbf16>
    %11 = tpu.concatenate %9, %10 in 0 : vector<8x256xbf16>, vector<8x256xbf16> -> vector<16x256xbf16>
    %c0_7 = arith.constant 0 : index
    %c0_8 = arith.constant 0 : index
    %12 = vector.load %arg6[%c0_7, %c0_8] : memref<128x256xbf16, #tpu.memory_space<vmem>>, vector<16x256xbf16>
    tpu.vector_store %arg6[%c0_7, %c0_8], %11 {strides = array<i32>} : memref<128x256xbf16, #tpu.memory_space<vmem>>, vector<16x256xbf16>,
    %13 = vector.extract_strided_slice %5 {offsets = [0, 2], sizes = [8, 256], strides = [1, 1]} : vector<8x384xbf16> to vector<8x256xbf16>
    %14 = vector.extract_strided_slice %3 {offsets = [1, 0], sizes = [1, 256], strides = [1, 1]} : vector<2x256xbf16> to vector<1x256xbf16>
    %15 = vector.broadcast %14 : vector<1x256xbf16> to vector<8x256xbf16>
    %16 = arith.mulf %13, %15 : vector<8x256xbf16>
    %17 = vector.extract_strided_slice %5 {offsets = [0, 16], sizes = [8, 256], strides = [1, 1]} : vector<8x384xbf16> to vector<8x256xbf16>
    %18 = vector.extract_strided_slice %3 {offsets = [0, 0], sizes = [1, 256], strides = [1, 1]} : vector<2x256xbf16> to vector<1x256xbf16>
    %19 = vector.broadcast %18 : vector<1x256xbf16> to vector<8x256xbf16>
    %20 = arith.mulf %17, %19 : vector<8x256xbf16>
    %21 = tpu.concatenate %16, %20 in 0 : vector<8x256xbf16>, vector<8x256xbf16> -> vector<16x256xbf16>
    %c16 = arith.constant 16 : index
    %c0_9 = arith.constant 0 : index
    %22 = vector.load %arg6[%c16, %c0_9] : memref<128x256xbf16, #tpu.memory_space<vmem>>, vector<16x256xbf16>
    tpu.vector_store %arg6[%c16, %c0_9], %21 {strides = array<i32>} : memref<128x256xbf16, #tpu.memory_space<vmem>>, vector<16x256xbf16>,
    %23 = vector.extract_strided_slice %5 {offsets = [0, 17], sizes = [8, 256], strides = [1, 1]} : vector<8x384xbf16> to vector<8x256xbf16>
    %24 = vector.extract_strided_slice %5 {offsets = [0, 18], sizes = [8, 256], strides = [1, 1]} : vector<8x384xbf16> to vector<8x256xbf16>
    %25 = vector.extract_strided_slice %3 {offsets = [1, 0], sizes = [1, 256], strides = [1, 1]} : vector<2x256xbf16> to vector<1x256xbf16>
    %26 = vector.broadcast %25 : vector<1x256xbf16> to vector<8x256xbf16>
    %27 = arith.mulf %24, %26 : vector<8x256xbf16>
    %28 = tpu.concatenate %23, %27 in 0 : vector<8x256xbf16>, vector<8x256xbf16> -> vector<16x256xbf16>
    %c32 = arith.constant 32 : index
    %c0_10 = arith.constant 0 : index
    %29 = vector.load %arg6[%c32, %c0_10] : memref<128x256xbf16, #tpu.memory_space<vmem>>, vector<16x256xbf16>
    tpu.vector_store %arg6[%c32, %c0_10], %28 {strides = array<i32>} : memref<128x256xbf16, #tpu.memory_space<vmem>>, vector<16x256xbf16>,
    %30 = vector.extract_strided_slice %5 {offsets = [0, 32], sizes = [8, 256], strides = [1, 1]} : vector<8x384xbf16> to vector<8x256xbf16>
    %31 = vector.extract_strided_slice %3 {offsets = [0, 0], sizes = [1, 256], strides = [1, 1]} : vector<2x256xbf16> to vector<1x256xbf16>
    %32 = vector.broadcast %31 : vector<1x256xbf16> to vector<8x256xbf16>
    %33 = arith.mulf %30, %32 : vector<8x256xbf16>
    %34 = vector.extract_strided_slice %5 {offsets = [0, 33], sizes = [8, 256], strides = [1, 1]} : vector<8x384xbf16> to vector<8x256xbf16>
    %35 = tpu.concatenate %33, %34 in 0 : vector<8x256xbf16>, vector<8x256xbf16> -> vector<16x256xbf16>
    %c48 = arith.constant 48 : index
    %c0_11 = arith.constant 0 : index
    %36 = vector.load %arg6[%c48, %c0_11] : memref<128x256xbf16, #tpu.memory_space<vmem>>, vector<16x256xbf16>
    tpu.vector_store %arg6[%c48, %c0_11], %35 {strides = array<i32>} : memref<128x256xbf16, #tpu.memory_space<vmem>>, vector<16x256xbf16>,
    %37 = vector.extract_strided_slice %5 {offsets = [0, 34], sizes = [8, 256], strides = [1, 1]} : vector<8x384xbf16> to vector<8x256xbf16>
    %38 = vector.extract_strided_slice %3 {offsets = [1, 0], sizes = [1, 256], strides = [1, 1]} : vector<2x256xbf16> to vector<1x256xbf16>
    %39 = vector.broadcast %38 : vector<1x256xbf16> to vector<8x256xbf16>
    %40 = arith.mulf %37, %39 : vector<8x256xbf16>
    %cst_12 = arith.constant 0.000000e+00 : bf16
    %41 = vector.broadcast %cst_12 : bf16 to vector<8x256xbf16>
    %42 = tpu.concatenate %40, %41 in 0 : vector<8x256xbf16>, vector<8x256xbf16> -> vector<16x256xbf16>
    %c64 = arith.constant 64 : index
    %c0_13 = arith.constant 0 : index
    %43 = vector.load %arg6[%c64, %c0_13] : memref<128x256xbf16, #tpu.memory_space<vmem>>, vector<16x256xbf16>
    tpu.vector_store %arg6[%c64, %c0_13], %42 {strides = array<i32>} : memref<128x256xbf16, #tpu.memory_space<vmem>>, vector<16x256xbf16>,
    %c0_14 = arith.constant 0 : index
    %c0_15 = arith.constant 0 : index
    %c0_16 = arith.constant 0 : index
    %44 = vector.load %arg2[%c0_14, %c0_15, %c0_16] : memref<2x8x128xbf16, #tpu.memory_space<vmem>>, vector<1x8x128xbf16>
    %45 = vector.shape_cast %44 : vector<1x8x128xbf16> to vector<8x128xbf16>
    %c0_17 = arith.constant 0 : index
    %c0_18 = arith.constant 0 : index
    %46 = vector.load %arg6[%c0_17, %c0_18] : memref<128x256xbf16, #tpu.memory_space<vmem>>, vector<128x256xbf16>
    %cst_19 = arith.constant dense<0.000000e+00> : vector<8x256xf32>
    %47 = tpu.matmul %45, %46, %cst_19 {dimension_numbers = #tpu.dot_dimension_numbers<[1], [0], [0], [1], [0, 0, 1, 1], [], []>} : vector<8x128xbf16>, vector<128x256xbf16>, vector<8x256xf32> -> vector<8x256xf32>
    %48 = arith.addf %47, %2 : vector<8x256xf32>
    %cst_20 = arith.constant 0.000000e+00 : f32
    %49 = vector.broadcast %cst_20 : f32 to vector<8x256xf32>
    %50 = arith.cmpf oge, %48, %49 : vector<8x256xf32>
    %cst_21 = arith.constant 1.41421354 : f32
    %cst_22 = arith.constant 0.282842726 : f32
    %51 = vector.broadcast %cst_21 : f32 to vector<8x256xf32>
    %52 = vector.broadcast %cst_22 : f32 to vector<8x256xf32>
    %53 = arith.select %50, %51, %52 : vector<8x256xi1>, vector<8x256xf32>
    %54 = arith.mulf %48, %53 : vector<8x256xf32>
    %c0_23 = arith.constant 0 : index
    %c0_24 = arith.constant 0 : index
    %c0_25 = arith.constant 0 : index
    %55 = vector.load %arg5[%c0_23, %c0_24, %c0_25] : memref<2x8x256xf32, #tpu.memory_space<vmem>>, vector<1x8x256xf32>
    %56 = vector.shape_cast %55 : vector<1x8x256xf32> to vector<8x256xf32>
    %57 = vector.shape_cast %54 : vector<8x256xf32> to vector<1x8x256xf32>
    tpu.vector_store %arg5[%c0_23, %c0_24, %c0_25], %57 {strides = array<i32>} : memref<2x8x256xf32, #tpu.memory_space<vmem>>, vector<1x8x256xf32>,
    %c1 = arith.constant 1 : index
    %c0_26 = arith.constant 0 : index
    %c0_27 = arith.constant 0 : index
    %58 = vector.load %arg1[%c1, %c0_26, %c0_27] : memref<2x8x384xbf16, #tpu.memory_space<vmem>>, vector<1x8x384xbf16>
    %59 = vector.shape_cast %58 : vector<1x8x384xbf16> to vector<8x384xbf16>
    %60 = vector.extract_strided_slice %59 {offsets = [0, 0], sizes = [8, 256], strides = [1, 1]} : vector<8x384xbf16> to vector<8x256xbf16>
    %61 = vector.extract_strided_slice %3 {offsets = [0, 0], sizes = [1, 256], strides = [1, 1]} : vector<2x256xbf16> to vector<1x256xbf16>
    %62 = vector.broadcast %61 : vector<1x256xbf16> to vector<8x256xbf16>
    %63 = arith.mulf %60, %62 : vector<8x256xbf16>
    %64 = vector.extract_strided_slice %59 {offsets = [0, 1], sizes = [8, 256], strides = [1, 1]} : vector<8x384xbf16> to vector<8x256xbf16>
    %65 = tpu.concatenate %63, %64 in 0 : vector<8x256xbf16>, vector<8x256xbf16> -> vector<16x256xbf16>
    %c0_28 = arith.constant 0 : index
    %c0_29 = arith.constant 0 : index
    %66 = vector.load %arg6[%c0_28, %c0_29] : memref<128x256xbf16, #tpu.memory_space<vmem>>, vector<16x256xbf16>
    tpu.vector_store %arg6[%c0_28, %c0_29], %65 {strides = array<i32>} : memref<128x256xbf16, #tpu.memory_space<vmem>>, vector<16x256xbf16>,
    %67 = vector.extract_strided_slice %59 {offsets = [0, 2], sizes = [8, 256], strides = [1, 1]} : vector<8x384xbf16> to vector<8x256xbf16>
    %68 = vector.extract_strided_slice %3 {offsets = [1, 0], sizes = [1, 256], strides = [1, 1]} : vector<2x256xbf16> to vector<1x256xbf16>
    %69 = vector.broadcast %68 : vector<1x256xbf16> to vector<8x256xbf16>
    %70 = arith.mulf %67, %69 : vector<8x256xbf16>
    %71 = vector.extract_strided_slice %59 {offsets = [0, 16], sizes = [8, 256], strides = [1, 1]} : vector<8x384xbf16> to vector<8x256xbf16>
    %72 = vector.extract_strided_slice %3 {offsets = [0, 0], sizes = [1, 256], strides = [1, 1]} : vector<2x256xbf16> to vector<1x256xbf16>
    %73 = vector.broadcast %72 : vector<1x256xbf16> to vector<8x256xbf16>
    %74 = arith.mulf %71, %73 : vector<8x256xbf16>
    %75 = tpu.concatenate %70, %74 in 0 : vector<8x256xbf16>, vector<8x256xbf16> -> vector<16x256xbf16>
    %c16_30 = arith.constant 16 : index
    %c0_31 = arith.constant 0 : index
    %76 = vector.load %arg6[%c16_30, %c0_31] : memref<128x256xbf16, #tpu.memory_space<vmem>>, vector<16x256xbf16>
    tpu.vector_store %arg6[%c16_30, %c0_31], %75 {strides = array<i32>} : memref<128x256xbf16, #tpu.memory_space<vmem>>, vector<16x256xbf16>,
    %77 = vector.extract_strided_slice %59 {offsets = [0, 17], sizes = [8, 256], strides = [1, 1]} : vector<8x384xbf16> to vector<8x256xbf16>
    %78 = vector.extract_strided_slice %59 {offsets = [0, 18], sizes = [8, 256], strides = [1, 1]} : vector<8x384xbf16> to vector<8x256xbf16>
    %79 = vector.extract_strided_slice %3 {offsets = [1, 0], sizes = [1, 256], strides = [1, 1]} : vector<2x256xbf16> to vector<1x256xbf16>
    %80 = vector.broadcast %79 : vector<1x256xbf16> to vector<8x256xbf16>
    %81 = arith.mulf %78, %80 : vector<8x256xbf16>
    %82 = tpu.concatenate %77, %81 in 0 : vector<8x256xbf16>, vector<8x256xbf16> -> vector<16x256xbf16>
    %c32_32 = arith.constant 32 : index
    %c0_33 = arith.constant 0 : index
    %83 = vector.load %arg6[%c32_32, %c0_33] : memref<128x256xbf16, #tpu.memory_space<vmem>>, vector<16x256xbf16>
    tpu.vector_store %arg6[%c32_32, %c0_33], %82 {strides = array<i32>} : memref<128x256xbf16, #tpu.memory_space<vmem>>, vector<16x256xbf16>,
    %84 = vector.extract_strided_slice %59 {offsets = [0, 32], sizes = [8, 256], strides = [1, 1]} : vector<8x384xbf16> to vector<8x256xbf16>
    %85 = vector.extract_strided_slice %3 {offsets = [0, 0], sizes = [1, 256], strides = [1, 1]} : vector<2x256xbf16> to vector<1x256xbf16>
    %86 = vector.broadcast %85 : vector<1x256xbf16> to vector<8x256xbf16>
    %87 = arith.mulf %84, %86 : vector<8x256xbf16>
    %88 = vector.extract_strided_slice %59 {offsets = [0, 33], sizes = [8, 256], strides = [1, 1]} : vector<8x384xbf16> to vector<8x256xbf16>
    %89 = tpu.concatenate %87, %88 in 0 : vector<8x256xbf16>, vector<8x256xbf16> -> vector<16x256xbf16>
    %c48_34 = arith.constant 48 : index
    %c0_35 = arith.constant 0 : index
    %90 = vector.load %arg6[%c48_34, %c0_35] : memref<128x256xbf16, #tpu.memory_space<vmem>>, vector<16x256xbf16>
    tpu.vector_store %arg6[%c48_34, %c0_35], %89 {strides = array<i32>} : memref<128x256xbf16, #tpu.memory_space<vmem>>, vector<16x256xbf16>,
    %91 = vector.extract_strided_slice %59 {offsets = [0, 34], sizes = [8, 256], strides = [1, 1]} : vector<8x384xbf16> to vector<8x256xbf16>
    %92 = vector.extract_strided_slice %3 {offsets = [1, 0], sizes = [1, 256], strides = [1, 1]} : vector<2x256xbf16> to vector<1x256xbf16>
    %93 = vector.broadcast %92 : vector<1x256xbf16> to vector<8x256xbf16>
    %94 = arith.mulf %91, %93 : vector<8x256xbf16>
    %cst_36 = arith.constant 0.000000e+00 : bf16
    %95 = vector.broadcast %cst_36 : bf16 to vector<8x256xbf16>
    %96 = tpu.concatenate %94, %95 in 0 : vector<8x256xbf16>, vector<8x256xbf16> -> vector<16x256xbf16>
    %c64_37 = arith.constant 64 : index
    %c0_38 = arith.constant 0 : index
    %97 = vector.load %arg6[%c64_37, %c0_38] : memref<128x256xbf16, #tpu.memory_space<vmem>>, vector<16x256xbf16>
    tpu.vector_store %arg6[%c64_37, %c0_38], %96 {strides = array<i32>} : memref<128x256xbf16, #tpu.memory_space<vmem>>, vector<16x256xbf16>,
    %c1_39 = arith.constant 1 : index
    %c0_40 = arith.constant 0 : index
    %c0_41 = arith.constant 0 : index
    %98 = vector.load %arg2[%c1_39, %c0_40, %c0_41] : memref<2x8x128xbf16, #tpu.memory_space<vmem>>, vector<1x8x128xbf16>
    %99 = vector.shape_cast %98 : vector<1x8x128xbf16> to vector<8x128xbf16>
    %c0_42 = arith.constant 0 : index
    %c0_43 = arith.constant 0 : index
    %100 = vector.load %arg6[%c0_42, %c0_43] : memref<128x256xbf16, #tpu.memory_space<vmem>>, vector<128x256xbf16>
    %cst_44 = arith.constant dense<0.000000e+00> : vector<8x256xf32>
    %101 = tpu.matmul %99, %100, %cst_44 {dimension_numbers = #tpu.dot_dimension_numbers<[1], [0], [0], [1], [0, 0, 1, 1], [], []>} : vector<8x128xbf16>, vector<128x256xbf16>, vector<8x256xf32> -> vector<8x256xf32>
    %102 = arith.addf %101, %2 : vector<8x256xf32>
    %cst_45 = arith.constant 0.000000e+00 : f32
    %103 = vector.broadcast %cst_45 : f32 to vector<8x256xf32>
    %104 = arith.cmpf oge, %102, %103 : vector<8x256xf32>
    %cst_46 = arith.constant 1.41421354 : f32
    %cst_47 = arith.constant 0.282842726 : f32
    %105 = vector.broadcast %cst_46 : f32 to vector<8x256xf32>
    %106 = vector.broadcast %cst_47 : f32 to vector<8x256xf32>
    %107 = arith.select %104, %105, %106 : vector<8x256xi1>, vector<8x256xf32>
    %108 = arith.mulf %102, %107 : vector<8x256xf32>
    %c1_48 = arith.constant 1 : index
    %c0_49 = arith.constant 0 : index
    %c0_50 = arith.constant 0 : index
    %109 = vector.load %arg5[%c1_48, %c0_49, %c0_50] : memref<2x8x256xf32, #tpu.memory_space<vmem>>, vector<1x8x256xf32>
    %110 = vector.shape_cast %109 : vector<1x8x256xf32> to vector<8x256xf32>
    %111 = vector.shape_cast %108 : vector<8x256xf32> to vector<1x8x256xf32>
    tpu.vector_store %arg5[%c1_48, %c0_49, %c0_50], %111 {strides = array<i32>} : memref<2x8x256xf32, #tpu.memory_space<vmem>>, vector<1x8x256xf32>,
    return
  }
  func.func @transform_0(%arg0: i32) -> (i32, i32, i32) {
    %c0_i32 = arith.constant 0 : i32
    %c0_i32_0 = arith.constant 0 : i32
    %c0_i32_1 = arith.constant 0 : i32
    return %arg0, %c0_i32, %c0_i32_0 : i32, i32, i32
  }
  func.func @transform_1(%arg0: i32) -> (i32, i32, i32) {
    %c0_i32 = arith.constant 0 : i32
    %c0_i32_0 = arith.constant 0 : i32
    %c0_i32_1 = arith.constant 0 : i32
    return %arg0, %c0_i32, %c0_i32_0 : i32, i32, i32
  }
  func.func @transform_2(%arg0: i32) -> (i32, i32) {
    %c0_i32 = arith.constant 0 : i32
    %c0_i32_0 = arith.constant 0 : i32
    %c0_i32_1 = arith.constant 0 : i32
    return %c0_i32, %c0_i32_0 : i32, i32
  }
  func.func @transform_3(%arg0: i32) -> (i32, i32) {
    %c0_i32 = arith.constant 0 : i32
    %c0_i32_0 = arith.constant 0 : i32
    %c0_i32_1 = arith.constant 0 : i32
    return %c0_i32, %c0_i32_0 : i32, i32
  }
  func.func @transform_4(%arg0: i32) -> (i32, i32, i32) {
    %c0_i32 = arith.constant 0 : i32
    %c0_i32_0 = arith.constant 0 : i32
    %c0_i32_1 = arith.constant 0 : i32
    return %arg0, %c0_i32, %c0_i32_0 : i32, i32, i32
  }
}

</mosaic_0001>

<bundles_post_ra>
// kernel: synthesis_layer_forward.1
= control target key start
LH: loop header
LB: loop body
LE: loop exit
PB: predicated region body
PF: predicated region fallthrough
CT: control target
= control target key end

     0   :  { %v41_v0 = vlaneseq  ;;  %v1110_v2 = vmov 1966171168   ;;  %s1111_s18 = smov 32   ;;  %s1112_s21 = smov 18   ;;  %vm145_vm0 = vcmask 130048   ;;  %vm223_vm1 = vcmask 146432   ;;  %s1398_s3 = inlined_call_operand.vmem [shape: bf16[2,256], index: 3, kind: input, shape index: {}]   ;;  %s1399_s0 = inlined_call_operand.vmem [shape: bf16[2,8,384], index: 0, kind: input, shape index: {}]   ;;  %s1400_s1 = inlined_call_operand.vmem [shape: bf16[2,8,128], index: 1, kind: input, shape index: {}]   ;;  %s1401_s2 = inlined_call_operand.vmem [shape: f32[8,256], index: 2, kind: input, shape index: {}]   ;;  %s1402_s4 = inlined_call_operand.vmem [shape: f32[2,8,256], index: 4, kind: output, shape index: {}]  }
   0x1   :  { %v974_v1 = vld.sshfl [vmem:[%s1398_s3] sm:$0x11 pattern:$0x75316420]  ;;  %v39_v3 = vunpack.c.l.s4 %v1110_v2  ;;  %v1167_v25 = vld [vmem:[%s1399_s0 + $0xc] sm:$0xff]  ;;  %s1113_s22 = smov 127  }
   0x2   :  { %v42_v4 = vshrl.u32 %v41_v0, 7  ;;  %v37_v5 = vcombine.high %v974_v1, %v974_v1  ;;  %v1157_v22 = vld [vmem:[%s1399_s0] sm:$0xff]  ;;  %v1173_v26 = vcombine.low %v1167_v25, %v1167_v25  ;;  %v1178_v27 = vld [vmem:[%s1399_s0 + $0x14] sm:$0xf]  ;;  %s1114_s25 = smov 16   ;;  %v1208_v32 = vcombine.high %v1167_v25, %v1167_v25  ;;  %s1116_s28 = smov 2  }
   0x3   :  { %v40_v6 = vunpack.c.0.s8 %v39_v3  ;;  %v1162_v24 = vcombine.high %v1157_v22, %v1157_v22  ;;  %v1183_v28 = vcombine.low %v1157_v22, %v1157_v22  ;;  %v1188_v29 = vld [vmem:[%s1399_s0 + $0x8] sm:$0xf]  ;;  %v1194_v30 = vcombine.low %v1178_v27, %v1178_v27  ;;  %s1115_s0 = smov 34   ;;  %s1117_s29 = smov 114  }
   0x4   :  { %v57_v10 = vsub.s32 0, %v42_v4  ;;  %v1200_v31 = vcombine.low %v1188_v29, %v1188_v29  ;;  %vm291_vm2 = vcmask 261120   ;;  %vm92_vm3 = vcmask 1039360   ;;  %s1118_s30 = smov 96   ;;  %s1120_s5 = smov 94  }
   0x5   :  { %v43_v7 = vsub.s32 %v40_v6, %v42_v4  ;;  %vm95_vm4 = vcmask 1043456   ;;  %vm349_vm5 = vcmask 277504   ;;  %vm136_vm6 = vcmask 15360   ;;  %s1121_s6 = smov 126   ;;  %s1122_s7 = smov 111  }
   0x6   :  { %vm173_vm7 = vcmask 932864   ;;  %vm396_vm8 = vcmask 769024   ;;  %vm338_vm9 = vcmask 785408   ;;  %vm280_vm10 = vcmask 908288  }
   0x7   :  { %v44_v8 = vrot.slane %v974_v1, %v43_v7  ;;  %v51_v9 = vrot.slane %v37_v5, %v43_v7  ;;  %vm212_vm11 = vcmask 1031168  }
   0x9   :  { %v114_v11 = vshrl.u32 %v44_v8, 16  ;;  %v121_v12 = vshrl.u32 %v51_v9, 16  ;;  %v53_v13 = vpack.i.b16 %v44_v8, %v44_v8  ;;  %v60_v14 = vpack.i.b16 %v51_v9, %v51_v9 }
   0xb   :  { %v115_v15 = vpack.i.b16 %v114_v11, %v114_v11  ;;  %v122_v16 = vpack.i.b16 %v121_v12, %v121_v12  ;;  %v58_v17 = vrot.slane %v53_v13, %v57_v10  ;;  %v65_v18 = vrot.slane %v60_v14, %v57_v10 }
   0xd   :  { %v120_v19 = vrot.slane %v115_v15, %v57_v10  ;;  %v127_v20 = vrot.slane %v122_v16, %v57_v10  ;;  %v1152_v21 = vcombine.low %v58_v17, %v65_v18 }
   0xf   :  { %v983_v23 = vcombine.low %v120_v19, %v127_v20  ;;  %288 = vrot.lane.b32.xlu1 %v1152_v21, %s1111_s18 }
  0x11   :  { %220 = vrot.lane.b32.xlu0 %v983_v23, %s1112_s21 }
  0x13   :  { %88 = vrot.lane.b32.xlu1 %v1162_v24, %s1113_s22 }
  0x15   :  { %142 = vrot.lane.b32.xlu0 %v1152_v21, %s1114_s25 }
  0x17   :  { %567 = vrot.lane.b32.xlu1 %v1173_v26, %s1113_s22 }
  0x19   :  { %86 = vrot.lane.b32.xlu0 %v1183_v28, %s1113_s22 }
  0x1b   :  { %571 = vrot.lane.b32.xlu1 %v1194_v30, %s1113_s22 }
  0x1d   :  { %90 = vrot.lane.b32.xlu0 %v1200_v31, %s1113_s22 }
  0x1f   :  { %346 = vrot.lane.b32.xlu1 %v983_v23, %s1115_s0 }
  0x21   :  { %569 = vrot.lane.b32.xlu0 %v1208_v32, %s1113_s22 }
  0x25   :  { %133 = vrot.lane.b32.xlu0 %v983_v23, %s1116_s28 }
  0x81   :  { %v289_v34 = vpop.permute.xlu1 %288 }
  0x82   :  { %v290_v47 = vrot.slane %v289_v34, 4 }
  0x83   :  { %v221_v33 = vpop.permute.xlu0 %220 }
  0x84   :  { %v222_v41 = vrot.slane %v221_v33, 4  ;;  %v292_v55 = vsel %vm291_vm2, %v290_v47, %v289_v34  ;;  %v296_v61 = vmul.bf16 %v290_v47, %v1188_v29  ;;  %v724_v13 = vmul.bf16 %v1178_v27, %v290_v47 }
  0x85   :  { %v89_v40 = vpop.permute.xlu1 %88  ;;  %v295_v57 = vmul.bf16 %v292_v55, %v1157_v22  ;;  %v723_v9 = vmul.bf16 %v1167_v25, %v292_v55 }
  0x86   :  { %v228_v46 = vmul.bf16 %v222_v41, %v1188_v29  ;;  %v224_v48 = vsel %vm223_vm1, %v222_v41, %v221_v33  ;;  %v664_v50 = vmul.bf16 %v1178_v27, %v222_v41  ;;  %v1003_v4 = vcombine.low %v296_v61, %v296_v61 }
  0x87   :  { %v143_v35 = vpop.permute.xlu0 %142  ;;  %v227_v53 = vmul.bf16 %v224_v48, %v1157_v22  ;;  %v663_v59 = vmul.bf16 %v1167_v25, %v224_v48  ;;  %v1001_v0 = vcombine.low %v295_v57, %v295_v57  ;;  %v1002_v1 = vcombine.high %v295_v57, %v295_v57 }
  0x88   :  { %v144_v36 = vrot.slane %v143_v35, 4  ;;  %v996_v54 = vcombine.low %v228_v46, %v228_v46  ;;  %v1052_v56 = vcombine.low %v664_v50, %v664_v50  ;;  %v1057_v19 = vcombine.low %v723_v9, %v723_v9 }
  0x89   :  { %v568_v51 = vpop.permute.xlu1 %567  ;;  %v994_v60 = vcombine.low %v227_v53, %v227_v53  ;;  %v995_v62 = vcombine.high %v227_v53, %v227_v53  ;;  %v1051_v2 = vcombine.high %v663_v59, %v663_v59  ;;  %v1050_v6 = vcombine.low %v663_v59, %v663_v59 }
  0x8a   :  { %v146_v37 = vsel %vm145_vm0, %v144_v36, %v143_v35  ;;  %v150_v38 = vmul.bf16 %v144_v36, %v1188_v29  ;;  %v596_v7 = vmul.bf16 %v1178_v27, %v144_v36  ;;  %v1058_v20 = vcombine.high %v723_v9, %v723_v9 }
  0x8b   :  { %v149_v39 = vmul.bf16 %v146_v37, %v1157_v22  ;;  %v595_v43 = vmul.bf16 %v1167_v25, %v146_v37  ;;  %v87_v52 = vpop.permute.xlu0 %86  ;;  %v1059_v33 = vcombine.low %v724_v13, %v724_v13 }
  0x8c   :  { %v989_v42 = vcombine.low %v150_v38, %v150_v38  ;;  %v1230_v3 = vsel %vm92_vm3, %v87_v52, %v89_v40  ;;  %v1045_v16 = vcombine.low %v596_v7, %v596_v7 }
  0x8d   :  { %v988_v44 = vcombine.high %v149_v39, %v149_v39  ;;  %v987_v45 = vcombine.low %v149_v39, %v149_v39  ;;  %v1043_v49 = vcombine.low %v595_v43, %v595_v43  ;;  %v572_v58 = vpop.permute.xlu1 %571  ;;  %v306_v10 = vsel %vm95_vm4, %v1001_v0, %v1230_v3 }
  0x8e   :  { %171 = vrot.lane.b32.xlu1 %v989_v42, %s1117_s29  ;;  %v1044_v12 = vcombine.high %v595_v43, %v595_v43  ;;  %v739_v42 = vsel %vm95_vm4, %v1059_v33, %v572_v58 }
  0x8f   :  { %169 = vrot.lane.b32.xlu0 %v988_v44, %s1117_s29  ;;  %v91_v63 = vpop.permute.xlu0 %90  ;;  %v1063_v50 = vcombine.high %v739_v42, %v739_v42 }
  0x90   :  { %v1233_v5 = vsel %vm92_vm3, %v89_v40, %v91_v63  ;;  %v311_v14 = vsel %vm95_vm4, %v1003_v4, %v91_v63 }
  0x91   :  { %v347_v8 = vpop.permute.xlu1 %346  ;;  %v308_v11 = vsel %vm95_vm4, %v1002_v1, %v1233_v5  ;;  %v1005_v23 = vcombine.low %v311_v14, %v311_v14  ;;  %v1007_v38 = vcombine.high %v311_v14, %v311_v14 }
  0x92   :  { %167 = vrot.lane.b32.xlu1 %v987_v45, %s1117_s29  ;;  %v348_v15 = vrot.slane %v347_v8, 4  ;;  %v1004_v18 = vcombine.low %v306_v10, %v308_v11  ;;  %v1006_v37 = vcombine.high %v306_v10, %v308_v11  ;;  %v1061_v45 = vcombine.low %v739_v42, %v739_v42 }
  0x93   :  { %613 = vrot.lane.b32.xlu0 %v1043_v49, %s1117_s29  ;;  %v570_v17 = vpop.permute.xlu0 %569 }
  0x94   :  { %v1248_v34 = vsel %vm92_vm3, %v568_v51, %v570_v17  ;;  %v1251_v35 = vsel %vm92_vm3, %v570_v17, %v572_v58  ;;  %v350_v36 = vsel %vm349_vm5, %v348_v15, %v347_v8  ;;  %v354_v43 = vmul.bf16 %v348_v15, %v1188_v29 }
  0x95   :  { %v734_v39 = vsel %vm95_vm4, %v1057_v19, %v1248_v34  ;;  %v736_v40 = vsel %vm95_vm4, %v1058_v20, %v1251_v35  ;;  %v353_v41 = vmul.bf16 %v350_v36, %v1157_v22  ;;  %v773_v51 = vmul.bf16 %v1167_v25, %v350_v36 }
  0x96   :  { %241 = vrot.lane.b32.xlu1 %v996_v54, %s1113_s22  ;;  %v1060_v44 = vcombine.low %v734_v39, %v736_v40  ;;  %v1010_v48 = vcombine.low %v354_v43, %v354_v43  ;;  %v1062_v49 = vcombine.high %v734_v39, %v736_v40  ;;  %v774_v54 = vmul.bf16 %v1178_v27, %v348_v15 }
  0x97   :  { %677 = vrot.lane.b32.xlu0 %v1052_v56, %s1113_s22  ;;  %v1008_v46 = vcombine.low %v353_v41, %v353_v41  ;;  %v1009_v47 = vcombine.high %v353_v41, %v353_v41  ;;  %v1119_v56 = vmov 0   ;;  %v1065_v61 = vcombine.high %v773_v51, %v773_v51  ;;  %v134_v11 = vpop.permute.xlu0 %133 }
  0x98   :  { %v369_v55 = vsel %vm95_vm4, %v1010_v48, 0  ;;  %v1026_v57 = vcombine.high %v1119_v56, %v1119_v56  ;;  %v1025_v58 = vcombine.low %v1119_v56, %v1119_v56  ;;  %533 = vmatprep.mubr.bf16.mxu0 %v1119_v56  ;;  %952 = vmatprep.mubr.bf16.mxu1 %v1119_v56  ;;  %v1066_v63 = vcombine.low %v774_v54, %v774_v54 }
  0x99   :  { %v365_v52 = vsel %vm95_vm4, %v1008_v46, 0  ;;  %v367_v53 = vsel %vm95_vm4, %v1009_v47, 0  ;;  %v1014_v1 = vcombine.high %v369_v55, %v369_v55  ;;  %v786_v4 = vsel %vm95_vm4, %v1065_v61, 0 }
  0x9a   :  { %237 = vrot.lane.b32.xlu1 %v994_v60, %s1113_s22  ;;  %v1011_v59 = vcombine.low %v365_v52, %v367_v53  ;;  %v1064_v60 = vcombine.low %v773_v51, %v773_v51  ;;  %501 = vmatprep.subr.bf16.mxu0 %v1026_v57  ;;  %v1013_v0 = vcombine.high %v365_v52, %v367_v53 }
  0x9b   :  { %239 = vrot.lane.b32.xlu0 %v995_v62, %s1113_s22  ;;  %v1012_v62 = vcombine.low %v369_v55, %v369_v55  ;;  %502 = vmatpush1.bf16.msra.mxu0 %v1025_v58 }
  0x9c   :  { %920 = vmatprep.subr.bf16.mxu1 %v1026_v57  ;;  %503 = vmatprep.subr.bf16.mxu0 %v1026_v57 }
  0x9d   :  { %921 = vmatpush1.bf16.msra.mxu1 %v1025_v58 }
  0x9e   :  { %675 = vrot.lane.b32.xlu1 %v1051_v2, %s1113_s22  ;;  %922 = vmatprep.subr.bf16.mxu1 %v1026_v57  ;;  %v784_v2 = vsel %vm95_vm4, %v1064_v60, 0 }
  0x9f   :  { %673 = vrot.lane.b32.xlu0 %v1050_v6, %s1113_s22  ;;  %v788_v6 = vsel %vm95_vm4, %v1066_v63, 0  ;;  %504 = vmatpush1.bf16.msra.mxu0 %v1025_v58  ;;  %v1067_v7 = vcombine.low %v784_v2, %v786_v4  ;;  %v1069_v9 = vcombine.high %v784_v2, %v786_v4 }
  0xa0   :  { %505 = vmatprep.subr.bf16.mxu0 %v1026_v57  ;;  %v1068_v8 = vcombine.low %v788_v6, %v788_v6  ;;  %v1070_v10 = vcombine.high %v788_v6, %v788_v6 }
  0xa1   :  { %923 = vmatpush1.bf16.msra.mxu1 %v1025_v58 }
  0xa2   :  { %615 = vrot.lane.b32.xlu1 %v1044_v12, %s1117_s29  ;;  %924 = vmatprep.subr.bf16.mxu1 %v1026_v57  ;;  %v135_v12 = vrot.slane %v134_v11, 4 }
  0xa3   :  { %617 = vrot.lane.b32.xlu0 %v1045_v16, %s1117_s29  ;;  %506 = vmatpush1.bf16.msra.mxu0 %v1025_v58 }
  0xa4   :  { %v141_v13 = vmul.bf16 %v135_v12, %v1188_v29  ;;  %v137_v14 = vsel %vm136_vm6, %v135_v12, %v134_v11 }
  0xa5   :  { %925 = vmatpush1.bf16.msra.mxu1 %v1025_v58  ;;  %v140_v16 = vmul.bf16 %v137_v14, %v1157_v22  ;;  %v593_v48 = vmul.bf16 %v1167_v25, %v137_v14 }
  0xa6   :  { %325 = vrot.lane.b32.xlu1 %v1004_v18, %s1118_s30  ;;  %v986_v15 = vcombine.low %v141_v13, %v141_v13 }
  0xa7   :  { %327 = vrot.lane.b32.xlu0 %v1005_v23, %s1118_s30  ;;  %v985_v20 = vcombine.high %v140_v16, %v140_v16  ;;  %v984_v36 = vcombine.low %v140_v16, %v140_v16  ;;  %v1040_v52 = vcombine.low %v593_v48, %v593_v48  ;;  %v1041_v55 = vcombine.high %v593_v48, %v593_v48 }
  0xaa   :  { %329 = vrot.lane.b32.xlu1 %v1006_v37, %s1118_s30 }
  0xab   :  { %331 = vrot.lane.b32.xlu0 %v1007_v38, %s1118_s30 }
  0xae   :  { %753 = vrot.lane.b32.xlu1 %v1060_v44, %s1118_s30 }
  0xaf   :  { %755 = vrot.lane.b32.xlu0 %v1061_v45, %s1118_s30 }
  0xb2   :  { %757 = vrot.lane.b32.xlu1 %v1062_v49, %s1118_s30  ;;  %v594_v49 = vmul.bf16 %v1178_v27, %v135_v12 }
  0xb3   :  { %759 = vrot.lane.b32.xlu0 %v1063_v50, %s1118_s30 }
  0xb4   :  { %v1042_v54 = vcombine.low %v594_v49, %v594_v49 }
  0xb6   :  { %383 = vrot.lane.b32.xlu1 %v1011_v59, %s1120_s5 }
  0xb7   :  { %385 = vrot.lane.b32.xlu0 %v1012_v62, %s1120_s5 }
  0xba   :  { %387 = vrot.lane.b32.xlu1 %v1013_v0, %s1120_s5 }
  0xbb   :  { %389 = vrot.lane.b32.xlu0 %v1014_v1, %s1120_s5 }
  0xbe   :  { %802 = vrot.lane.b32.xlu1 %v1067_v7, %s1120_s5 }
  0xbf   :  { %804 = vrot.lane.b32.xlu0 %v1068_v8, %s1120_s5 }
  0xc2   :  { %806 = vrot.lane.b32.xlu1 %v1069_v9, %s1120_s5 }
  0xc3   :  { %808 = vrot.lane.b32.xlu0 %v1070_v10, %s1120_s5 }
 0x100   :  { %v172_v17 = vpop.permute.xlu1 %171 }
 0x101   :  { %v184_v18 = vsel %vm95_vm4, %v986_v15, %v172_v17  ;;  %v170_v19 = vpop.permute.xlu0 %169 }
 0x102   :  { %v991_v23 = vcombine.low %v184_v18, %v184_v18  ;;  %v175_v33 = vsel %vm173_vm7, %v170_v19, %v172_v17  ;;  %v993_v39 = vcombine.high %v184_v18, %v184_v18 }
 0x103   :  { %v181_v40 = vsel %vm95_vm4, %v985_v20, %v175_v33 }
 0x104   :  { %v168_v37 = vpop.permute.xlu1 %167  ;;  %200 = vrot.lane.b32.xlu0 %v991_v23, %s1121_s6 }
 0x105   :  { %v174_v29 = vsel %vm173_vm7, %v168_v37, %v170_v19  ;;  %v614_v38 = vpop.permute.xlu0 %613 }
 0x106   :  { %v178_v41 = vsel %vm95_vm4, %v984_v36, %v174_v29 }
 0x107   :  { %v990_v42 = vcombine.low %v178_v41, %v181_v40  ;;  %v992_v45 = vcombine.high %v178_v41, %v181_v40 }
 0x108   :  { %v242_v43 = vpop.permute.xlu1 %241  ;;  %204 = vrot.lane.b32.xlu0 %v993_v39, %s1121_s6 }
 0x109   :  { %198 = vrot.lane.b32.xlu1 %v990_v42, %s1121_s6  ;;  %v678_v44 = vpop.permute.xlu0 %677  ;;  %v253_v0 = vsel %vm95_vm4, %v1200_v31, %v242_v43 }
 0x10a   :  { %v998_v8 = vcombine.low %v253_v0, %v253_v0 }
 0x10c   :  { %v238_v46 = vpop.permute.xlu1 %237 }
 0x10d   :  { %202 = vrot.lane.b32.xlu1 %v992_v45, %s1121_s6  ;;  %v240_v47 = vpop.permute.xlu0 %239 }
 0x10e   :  { %v243_v56 = vsel %vm92_vm3, %v238_v46, %v240_v47  ;;  %v244_v59 = vsel %vm92_vm3, %v240_v47, %v242_v43 }
 0x10f   :  { %v247_v4 = vsel %vm95_vm4, %v1183_v28, %v243_v56  ;;  %v250_v6 = vsel %vm95_vm4, %v1162_v24, %v244_v59  ;;  %v1000_v28 = vcombine.high %v253_v0, %v253_v0  ;;  %v689_v24 = vsel %vm95_vm4, %v1194_v30, %v678_v44 }
 0x110   :  { %v676_v50 = vpop.permute.xlu1 %675  ;;  %v997_v9 = vcombine.low %v247_v4, %v250_v6  ;;  %v999_v13 = vcombine.high %v247_v4, %v250_v6  ;;  %v1054_v18 = vcombine.low %v689_v24, %v689_v24  ;;  %v1056_v23 = vcombine.high %v689_v24, %v689_v24 }
 0x111   :  { %v674_v51 = vpop.permute.xlu0 %673  ;;  %v680_v11 = vsel %vm92_vm3, %v676_v50, %v678_v44 }
 0x112   :  { %v679_v12 = vsel %vm92_vm3, %v674_v51, %v676_v50  ;;  %v686_v15 = vsel %vm95_vm4, %v1208_v32, %v680_v11 }
 0x113   :  { %v683_v16 = vsel %vm95_vm4, %v1173_v26, %v679_v12 }
 0x114   :  { %v616_v53 = vpop.permute.xlu1 %615  ;;  %v1053_v19 = vcombine.low %v683_v16, %v686_v15  ;;  %v1055_v33 = vcombine.high %v683_v16, %v686_v15 }
 0x115   :  { %v619_v57 = vsel %vm173_vm7, %v614_v38, %v616_v53  ;;  %v618_v58 = vpop.permute.xlu0 %617 }
 0x116   :  { %v623_v60 = vsel %vm95_vm4, %v1040_v52, %v619_v57  ;;  %v620_v61 = vsel %vm173_vm7, %v616_v53, %v618_v58  ;;  %v629_v62 = vsel %vm95_vm4, %v1042_v54, %v618_v58 }
 0x117   :  { %v626_v27 = vsel %vm95_vm4, %v1041_v55, %v620_v61  ;;  %v1047_v63 = vcombine.low %v629_v62, %v629_v62  ;;  %v1049_v41 = vcombine.high %v629_v62, %v629_v62 }
 0x118   :  { %v1046_v1 = vcombine.low %v623_v60, %v626_v27  ;;  %v326_v2 = vpop.permute.xlu1 %325  ;;  %v1048_v42 = vcombine.high %v623_v60, %v626_v27 }
 0x119   :  { %645 = vrot.lane.b32.xlu0 %v1047_v63, %s1121_s6  ;;  %v328_v7 = vpop.permute.xlu0 %327  ;;  %v333_v36 = vrot.slane %v326_v2, 4 }
 0x11a   :  { %643 = vrot.lane.b32.xlu1 %v1046_v1, %s1121_s6  ;;  %v334_v32 = vrot.slane %v328_v7, 4 }
 0x11c   :  { %v330_v10 = vpop.permute.xlu1 %329  ;;  %v337_v43 = vsel %vm95_vm4, %v333_v36, %v334_v32 }
 0x11d   :  { %269 = vrot.lane.b32.xlu0 %v998_v8, %s1122_s7  ;;  %v332_v31 = vpop.permute.xlu0 %331  ;;  %v335_v37 = vrot.slane %v330_v10, 4  ;;  %v339_v52 = vsel %vm338_vm9, %v326_v2, %v337_v43 }
 0x11e   :  { %267 = vrot.lane.b32.xlu1 %v997_v9, %s1122_s7  ;;  %v336_v29 = vrot.slane %v332_v31, 4 }
 0x120   :  { %v1310_v14 = vpop.permute.xlu1 %753  ;;  %v340_v44 = vsel %vm95_vm4, %v335_v37, %v336_v29 }
 0x121   :  { %273 = vrot.lane.b32.xlu0 %v1000_v28, %s1122_s7  ;;  %v756_v17 = vpop.permute.xlu0 %755  ;;  %v761_v50 = vrot.slane %v1310_v14, 4  ;;  %v341_v53 = vsel %vm338_vm9, %v330_v10, %v340_v44 }
 0x122   :  { %271 = vrot.lane.b32.xlu1 %v999_v13, %s1122_s7  ;;  %v762_v54 = vrot.slane %v756_v17, 4  ;;  %v1022_v0 = vcombine.high %v339_v52, %v341_v53  ;;  %v1021_v9 = vcombine.low %v339_v52, %v341_v53 }
 0x124   :  { %v758_v20 = vpop.permute.xlu1 %757  ;;  %v765_v1 = vsel %vm95_vm4, %v761_v50, %v762_v54 }
 0x125   :  { %705 = vrot.lane.b32.xlu0 %v1054_v18, %s1122_s7  ;;  %v760_v30 = vpop.permute.xlu0 %759  ;;  %v763_v55 = vrot.slane %v758_v20, 4  ;;  %v766_v11 = vsel %vm338_vm9, %v1310_v14, %v765_v1 }
 0x126   :  { %703 = vrot.lane.b32.xlu1 %v1053_v19, %s1122_s7  ;;  %v764_v56 = vrot.slane %v760_v30, 4 }
 0x128   :  { %v384_v26 = vpop.permute.xlu1 %383  ;;  %v767_v2 = vsel %vm95_vm4, %v763_v55, %v764_v56 }
 0x129   :  { %709 = vrot.lane.b32.xlu0 %v1056_v23, %s1122_s7  ;;  %v391_v38 = vrot.slane %v384_v26, 4  ;;  %v386_v39 = vpop.permute.xlu0 %385  ;;  %v768_v12 = vsel %vm338_vm9, %v758_v20, %v767_v2 }
 0x12a   :  { %707 = vrot.lane.b32.xlu1 %v1055_v33, %s1122_s7  ;;  %v392_v40 = vrot.slane %v386_v39, 4  ;;  %v1079_v16 = vcombine.high %v766_v11, %v768_v12  ;;  %v1078_v17 = vcombine.low %v766_v11, %v768_v12 }
 0x12c   :  { %v395_v45 = vsel %vm95_vm4, %v391_v38, %v392_v40  ;;  %v388_v46 = vpop.permute.xlu1 %387 }
 0x12d   :  { %649 = vrot.lane.b32.xlu0 %v1049_v41, %s1121_s6  ;;  %v393_v47 = vrot.slane %v388_v46, 4  ;;  %v390_v48 = vpop.permute.xlu0 %389  ;;  %v397_v51 = vsel %vm396_vm8, %v384_v26, %v395_v45 }
 0x12e   :  { %647 = vrot.lane.b32.xlu1 %v1048_v42, %s1121_s6  ;;  %v394_v49 = vrot.slane %v390_v48, 4 }
 0x130   :  { %v398_v57 = vsel %vm95_vm4, %v393_v47, %v394_v49  ;;  %v803_v58 = vpop.permute.xlu1 %802 }
 0x131   :  { %v810_v59 = vrot.slane %v803_v58, 4  ;;  %v805_v60 = vpop.permute.xlu0 %804  ;;  %v399_v61 = vsel %vm396_vm8, %v388_v46, %v398_v57 }
 0x132   :  { %v811_v62 = vrot.slane %v805_v60, 4  ;;  %v1024_v27 = vcombine.high %v397_v51, %v399_v61  ;;  %v1023_v63 = vcombine.low %v397_v51, %v399_v61 }
 0x134   :  { %v814_v4 = vsel %vm95_vm4, %v810_v59, %v811_v62  ;;  %v807_v6 = vpop.permute.xlu1 %806  ;;  %507 = vmatprep.subr.bf16.mxu0 %v1024_v27 }
 0x135   :  { %v812_v7 = vrot.slane %v807_v6, 4  ;;  %v809_v8 = vpop.permute.xlu0 %808  ;;  %508 = vmatpush1.bf16.msra.mxu0 %v1023_v63  ;;  %v815_v31 = vsel %vm396_vm8, %v803_v58, %v814_v4  ;;  %v72_v58 = vmul.bf16 %v1152_v21, %v1157_v22 }
 0x136   :  { %v813_v10 = vrot.slane %v809_v8, 4  ;;  %509 = vmatprep.subr.bf16.mxu0 %v1022_v0 }
 0x137   :  { %v977_v27 = vcombine.high %v72_v58, %v72_v58  ;;  %v976_v8 = vcombine.low %v72_v58, %v72_v58 }
 0x138   :  { %v816_v28 = vsel %vm95_vm4, %v812_v7, %v813_v10 }
 0x139   :  { %v817_v24 = vsel %vm396_vm8, %v807_v6, %v816_v28  ;;  %510 = vmatpush1.bf16.msra.mxu0 %v1021_v9  ;;  %v101_v11 = vsel %vm95_vm4, %v977_v27, %v1233_v5 }
 0x13a   :  { %v1081_v13 = vcombine.high %v815_v31, %v817_v24  ;;  %v1080_v15 = vcombine.low %v815_v31, %v817_v24 }
 0x13c   :  { %926 = vmatprep.subr.bf16.mxu1 %v1081_v13 }
 0x13d   :  { %927 = vmatpush1.bf16.msra.mxu1 %v1080_v15  ;;  %v553_v15 = vmul.bf16 %v1167_v25, %v1152_v21 }
 0x13e   :  { %928 = vmatprep.subr.bf16.mxu1 %v1079_v16 }
 0x13f   :  { %v1033_v25 = vcombine.low %v553_v15, %v553_v15 }
 0x141   :  { %929 = vmatpush1.bf16.msra.mxu1 %v1078_v17  ;;  %v98_v17 = vsel %vm95_vm4, %v976_v8, %v1230_v3 }
 0x176   :  { %v201_v18 = vpop.permute.xlu0 %200 }
 0x177   :  { %v207_v42 = vrot.slane %v201_v18, 4 }
 0x17a   :  { %v205_v30 = vpop.permute.xlu0 %204 }
 0x17b   :  { %v199_v19 = vpop.permute.xlu1 %198  ;;  %v209_v26 = vrot.slane %v205_v30, 4  ;;  %v1034_v30 = vcombine.high %v553_v15, %v553_v15 }
 0x17c   :  { %v206_v38 = vrot.slane %v199_v19, 4 }
 0x17d   :  { %v580_v3 = vsel %vm95_vm4, %v1034_v30, %v1251_v35 }
 0x17e   :  { %v211_v46 = vsel %vm95_vm4, %v206_v38, %v207_v42 }
 0x17f   :  { %v203_v23 = vpop.permute.xlu1 %202  ;;  %v213_v57 = vsel %vm212_vm11, %v199_v19, %v211_v46  ;;  %v404_v19 = vld [vmem:[%s1400_s1] sm:$0xf] }
 0x180   :  { %v208_v32 = vrot.slane %v203_v23, 4 }
 0x182   :  { %v214_v43 = vsel %vm95_vm4, %v208_v32, %v209_v26  ;;  %v25_v32 = vld [vmem:[%s1401_s2 + $0x8] sm:$0xff] }
 0x183   :  { %v215_v49 = vsel %vm212_vm11, %v203_v23, %v214_v43 }
 0x184   :  { %v1018_v59 = vcombine.high %v213_v57, %v215_v49  ;;  %v1017_v4 = vcombine.low %v213_v57, %v215_v49 }
 0x18b   :  { %v646_v14 = vpop.permute.xlu0 %645 }
 0x18c   :  { %v1342_v33 = vpop.permute.xlu1 %643  ;;  %v652_v63 = vrot.slane %v646_v14, 4  ;;  %v577_v14 = vsel %vm95_vm4, %v1033_v25, %v1248_v34  ;;  %v1123_v34 = vmov 0.28284273  }
 0x18d   :  { %v651_v0 = vrot.slane %v1342_v33, 4 }
 0x18f   :  { %v270_v20 = vpop.permute.xlu0 %269  ;;  %v655_v12 = vsel %vm95_vm4, %v651_v0, %v652_v63 }
 0x190   :  { %v268_v36 = vpop.permute.xlu1 %267  ;;  %v276_v37 = vrot.slane %v270_v20, 4  ;;  %v656_v18 = vsel %vm212_vm11, %v1342_v33, %v655_v12  ;;  %v1071_v33 = vld [vmem:[%s1400_s1 + $0x4] sm:$0xf] }
 0x191   :  { %v275_v29 = vrot.slane %v268_v36, 4  ;;  %v24_v20 = vld [vmem:[%s1401_s2] sm:$0xff] }
 0x193   :  { %v274_v39 = vpop.permute.xlu0 %273  ;;  %v279_v44 = vsel %vm95_vm4, %v275_v29, %v276_v37 }
 0x194   :  { %v278_v40 = vrot.slane %v274_v39, 4  ;;  %v272_v41 = vpop.permute.xlu1 %271  ;;  %v281_v50 = vsel %vm280_vm10, %v268_v36, %v279_v44 }
 0x195   :  { %v277_v45 = vrot.slane %v272_v41, 4 }
 0x197   :  { %v282_v47 = vsel %vm95_vm4, %v277_v45, %v278_v40  ;;  %v706_v48 = vpop.permute.xlu0 %705 }
 0x198   :  { %v283_v51 = vsel %vm280_vm10, %v272_v41, %v282_v47  ;;  %v704_v52 = vpop.permute.xlu1 %703  ;;  %v712_v55 = vrot.slane %v706_v48, 4 }
 0x199   :  { %v1019_v53 = vcombine.low %v281_v50, %v283_v51  ;;  %v1020_v54 = vcombine.high %v281_v50, %v283_v51  ;;  %v711_v56 = vrot.slane %v704_v52, 4 }
 0x19b   :  { %511 = vmatprep.subr.bf16.mxu0 %v1020_v54  ;;  %v710_v60 = vpop.permute.xlu0 %709  ;;  %v715_v1 = vsel %vm95_vm4, %v711_v56, %v712_v55 }
 0x19c   :  { %v714_v61 = vrot.slane %v710_v60, 4  ;;  %v708_v62 = vpop.permute.xlu1 %707  ;;  %512 = vmatpush1.bf16.msra.mxu0 %v1019_v53  ;;  %v716_v22 = vsel %vm280_vm10, %v704_v52, %v715_v1 }
 0x19d   :  { %v713_v2 = vrot.slane %v708_v62, 4  ;;  %513 = vmatprep.subr.bf16.mxu0 %v1018_v59 }
 0x19f   :  { %v717_v6 = vsel %vm95_vm4, %v713_v2, %v714_v61  ;;  %v650_v7 = vpop.permute.xlu0 %649 }
 0x1a0   :  { %v718_v9 = vsel %vm280_vm10, %v708_v62, %v717_v6  ;;  %v654_v10 = vrot.slane %v650_v7, 4  ;;  %v648_v31 = vpop.permute.xlu1 %647  ;;  %514 = vmatpush1.bf16.msra.mxu0 %v1017_v4 }
 0x1a1   :  { %v1076_v28 = vcombine.low %v716_v22, %v718_v9  ;;  %v1077_v24 = vcombine.high %v716_v22, %v718_v9  ;;  %v653_v13 = vrot.slane %v648_v31, 4  ;;  %515 = vmatprep.subr.bf16.mxu0 %v101_v11 }
 0x1a3   :  { %v657_v16 = vsel %vm95_vm4, %v653_v13, %v654_v10  ;;  %930 = vmatprep.subr.bf16.mxu1 %v1077_v24 }
 0x1a4   :  { %v658_v5 = vsel %vm212_vm11, %v648_v31, %v657_v16  ;;  %516 = vmatpush1.bf16.msra.mxu0 %v98_v17  ;;  %931 = vmatpush1.bf16.msra.mxu1 %v1076_v28 }
 0x1a5   :  { %v1074_v23 = vcombine.low %v656_v18, %v658_v5  ;;  %v1075_v21 = vcombine.high %v656_v18, %v658_v5 }
 0x1a7   :  { %932 = vmatprep.subr.bf16.mxu1 %v1075_v21  ;;  %534 = vmatmul.mubr.bf16.vlgmr.msra.gmra.mxu0 %v404_v19 }
 0x1a8   :  { %933 = vmatpush1.bf16.msra.mxu1 %v1074_v23 }
 0x1a9   :  { %934 = vmatprep.subr.bf16.mxu1 %v580_v3 }
 0x1ac   :  { %935 = vmatpush1.bf16.msra.mxu1 %v577_v14 }
 0x1af   :  { %953 = vmatmul.mubr.bf16.vlgmr.msra.gmra.mxu1 %v1071_v33 }
 0x267   :  { %v535_v36 = vpop.f32.mrf.mxu0 }
 0x268   :  { %v536_v35 = vadd.f32 %v535_v36, %v24_v20 }
 0x269   :  { %v537_v37 = vpop.f32.mrf.mxu0 }
 0x26a   :  { %vm542_vm12 = vcmp.ge.f32.partialorder %v536_v35, 0.0  ;;  %v538_v29 = vadd.f32 %v537_v37, %v25_v32 }
 0x26b   :  { %v544_v26 = vsel %vm542_vm12, 1.4142135, %v1123_v34  ;;  %v539_v38 = vpop.f32.mrf.mxu0 }
 0x26c   :  { %v546_v39 = vmul.f32 %v544_v26, %v536_v35  ;;  %vm543_vm13 = vcmp.ge.f32.partialorder %v538_v29, 0.0 }
 0x26d   :  { %v545_v40 = vsel %vm543_vm13, 1.4142135, %v1123_v34  ;;  %v540_v41 = vpop.f32.mrf.mxu0 }
 0x26e   :  { %548 = vst [vmem:[%s1402_s4] sm:$0xff] %v546_v39  ;;  %v547_v42 = vmul.f32 %v545_v40, %v538_v29 }
 0x26f   :  { %v954_v43 = vpop.f32.mrf.mxu1 }
 0x270   :  { %549 = vst [vmem:[%s1402_s4 + $0x8] sm:$0xff] %v547_v42  ;;  %v955_v44 = vadd.f32 %v954_v43, %v24_v20 }
 0x271   :  { %v956_v45 = vpop.f32.mrf.mxu1 }
 0x272   :  { %vm961_vm14 = vcmp.ge.f32.partialorder %v955_v44, 0.0  ;;  %v957_v46 = vadd.f32 %v956_v45, %v25_v32 }
 0x273   :  { %v963_v47 = vsel %vm961_vm14, 1.4142135, %v1123_v34  ;;  %v958_v48 = vpop.f32.mrf.mxu1 }
 0x274   :  { %v965_v49 = vmul.f32 %v963_v47, %v955_v44  ;;  %vm962_vm15 = vcmp.ge.f32.partialorder %v957_v46, 0.0 }
 0x275   :  { %v964_v50 = vsel %vm962_vm15, 1.4142135, %v1123_v34  ;;  %v959_v51 = vpop.f32.mrf.mxu1 }
 0x276   :  { %1088 = vst [vmem:[%s1402_s4 + $0x10] sm:$0xff] %v965_v49  ;;  %v966_v52 = vmul.f32 %v964_v50, %v957_v46 }
 0x278   :  { %1089 = vst [vmem:[%s1402_s4 + $0x18] sm:$0xff] %v966_v52 }

</bundles_post_ra>
